<compile_context>
chip_gen: v5e
topology: v5e:2x2
jax: 0.10.0
libtpu: 0.0.40
codegen_flags: <defaults>
</compile_context>

<pallas_src>
import jax
import jax.numpy as jnp
from jax import lax
from jax.experimental import pallas as pl
from jax.experimental.pallas import tpu as pltpu


def _round_up(x: int, m: int) -> int:
    return (x + m - 1) // m * m


def _vmem_capacity_bytes(default: int = 64 * 1024 * 1024) -> int:
    """Physical VMEM per core; conservative (v7x-sized) default on failure."""
    try:
        info = pltpu.get_tpu_info()
        cap = getattr(info, "vmem_capacity_bytes", None)
        if cap:
            return int(cap)
    except Exception:
        pass
    return default


def _make_kernel(fuse_gather: bool, h_pad: int, tile_n: int):
    """Build the kernel body.

    fuse_gather=True  : refs = (ids_smem, wv, wp, w0, b0, w1, b1, out, emb_scratch)
    fuse_gather=False : refs = (emb, wp, w0, b0, w1, b1, out)
    """
    bf16 = jnp.bfloat16

    def proj_highway_store(emb_bf16, wp_ref, w0_ref, b0_ref, w1_ref, b1_ref, out_ref):
        # Projection (no bias): bf16 x bf16 -> f32 accumulator.
        x = jnp.dot(emb_bf16, wp_ref[...], preferred_element_type=jnp.float32)
        # Two highway layers; transform & gate fused into one (H_pad, 2*H_pad) dot.
        for w_ref, b_ref in ((w0_ref, b0_ref), (w1_ref, b1_ref)):
            tg = jnp.dot(x.astype(bf16), w_ref[...],
                         preferred_element_type=jnp.float32) + b_ref[...]
            t = jnp.maximum(tg[:, :h_pad], 0.0)          # relu(transform)
            g = jax.nn.sigmoid(tg[:, h_pad:])            # sigmoid(gate) -> EUP
            x = x + g * (t - x)                          # == g*t + (1-g)*x
        out_ref[...] = x.astype(out_ref.dtype)

    if fuse_gather:
        def kernel(ids_smem, wv_ref, wp_ref, w0_ref, b0_ref, w1_ref, b1_ref,
                   out_ref, emb_scratch):
            base = pl.program_id(0) * tile_n

            # Real gather: per-row dynamic loads from the VMEM-resident table,
            # indices read as scalars from SMEM (scalar-prefetched ids).
            def gather_row(r, carry):
                idx = ids_smem[base + r]
                emb_scratch[pl.ds(r, 1), :] = wv_ref[pl.ds(idx, 1), :]
                return carry

            lax.fori_loop(0, tile_n, gather_row, 0)

            emb = emb_scratch[...].astype(bf16)
            proj_highway_store(emb, wp_ref, w0_ref, b0_ref, w1_ref, b1_ref, out_ref)

        return kernel

    def kernel(emb_ref, wp_ref, w0_ref, b0_ref, w1_ref, b1_ref, out_ref):
        proj_highway_store(emb_ref[...], wp_ref, w0_ref, b0_ref, w1_ref, b1_ref, out_ref)

    return kernel


def prepare_params(word_vectors, params):
    """One-time packing/padding of all parameters (hoisted out of the forward)."""
    f32, bf16 = jnp.float32, jnp.bfloat16
    V, E = word_vectors.shape
    H = params["w_proj"].shape[1]
    E_pad = _round_up(E, 128)
    H_pad = _round_up(H, 128)

    # f32 table for exact in-kernel row gather; bf16 copy for the streamed fallback.
    wv_f32 = jnp.zeros((V, E_pad), f32).at[:, :E].set(word_vectors.astype(f32))

    wp = jnp.zeros((E_pad, H_pad), bf16).at[:E, :H].set(params["w_proj"].astype(bf16))

    def cat_pad(wt, bt, wg, bg):
        w = jnp.zeros((H_pad, 2 * H_pad), bf16)
        w = w.at[:H, :H].set(wt.astype(bf16))
        w = w.at[:H, H_pad:H_pad + H].set(wg.astype(bf16))
        b = jnp.zeros((1, 2 * H_pad), f32)
        b = b.at[:, :H].set(bt.astype(f32))
        b = b.at[:, H_pad:H_pad + H].set(bg.astype(f32))
        return w, b

    w0, b0 = cat_pad(params["w_t0"], params["b_t0"], params["w_g0"], params["b_g0"])
    w1, b1 = cat_pad(params["w_t1"], params["b_t1"], params["w_g1"], params["b_g1"])

    return {
        "V": V, "E": E, "H": H, "E_pad": E_pad, "H_pad": H_pad,
        "wv_f32": wv_f32,
        "wv_bf16": wv_f32.astype(bf16),
        "wp": wp, "w0": w0, "b0": b0, "w1": w1, "b1": b1,
    }


def custom_embedding_forward(x_ids, prepared, *,
                             max_tile_n=None,
                             vmem_table_budget_bytes=None,
                             vmem_limit_bytes=None):
    """x_ids: (B, S) int32.  prepared: output of prepare_params.  Returns (B, S, H) f32."""
    B, S = x_ids.shape
    V = prepared["V"]
    H = prepared["H"]
    E_pad = prepared["E_pad"]
    H_pad = prepared["H_pad"]
    N = B * S
    f32 = jnp.float32

    # ---- generation-aware budgets (v5e/v6e: 128 MiB VMEM; v7x: 64 MiB) ----------
    vmem_cap = _vmem_capacity_bytes()
    big_vmem = vmem_cap >= 96 * 1024 * 1024
    if vmem_limit_bytes is None:
        vmem_limit_bytes = (64 if big_vmem else 28) * 1024 * 1024
    if max_tile_n is None:
        max_tile_n = 1024 if big_vmem else 512
    if vmem_table_budget_bytes is None:
        vmem_table_budget_bytes = (24 if big_vmem else 8) * 1024 * 1024

    # Gate on the DOUBLE-BUFFERED f32 table footprint.
    fuse_gather = 2 * V * E_pad * 4 <= vmem_table_budget_bytes

    # ---- tile sizing: account for resident (2x-buffered) table + weights --------
    weight_bytes_resident = (2 * 2 * (E_pad * H_pad + 2 * H_pad * 2 * H_pad)   # bf16, 2x
                             + 2 * 4 * 2 * (2 * H_pad))                        # f32 biases, 2x
    resident = weight_bytes_resident + (2 * V * E_pad * 4 if fuse_gather else 0)
    per_row = (2 * H_pad * 4                                      # out stream (2x)
               + (E_pad * 4 if fuse_gather else 2 * E_pad * 2)    # emb scratch / stream
               + (E_pad * 2 + 6 * H_pad * 4))                     # in-kernel intermediates

    row_align = 8 if fuse_gather else 16          # bf16 emb stream likes 16-row blocks
    tile_n = min(max_tile_n, _round_up(N, row_align))
    while tile_n > row_align and resident + tile_n * per_row > int(0.75 * vmem_limit_bytes):
        tile_n //= 2
    tile_n = max(row_align, tile_n - tile_n % row_align)

    N_pad = _round_up(N, tile_n)
    grid = (N_pad // tile_n,)

    ids_flat = jnp.pad(x_ids.reshape(-1).astype(jnp.int32), (0, N_pad - N))  # pad id 0

    weights = (prepared["wp"], prepared["w0"], prepared["b0"],
               prepared["w1"], prepared["b1"])

    wspecs_fused = [
        pl.BlockSpec((E_pad, H_pad), lambda i, ids: (0, 0)),
        pl.BlockSpec((H_pad, 2 * H_pad), lambda i, ids: (0, 0)),
        pl.BlockSpec((1, 2 * H_pad), lambda i, ids: (0, 0)),
        pl.BlockSpec((H_pad, 2 * H_pad), lambda i, ids: (0, 0)),
        pl.BlockSpec((1, 2 * H_pad), lambda i, ids: (0, 0)),
    ]
    wspecs_plain = [
        pl.BlockSpec((E_pad, H_pad), lambda i: (0, 0)),
        pl.BlockSpec((H_pad, 2 * H_pad), lambda i: (0, 0)),
        pl.BlockSpec((1, 2 * H_pad), lambda i: (0, 0)),
        pl.BlockSpec((H_pad, 2 * H_pad), lambda i: (0, 0)),
        pl.BlockSpec((1, 2 * H_pad), lambda i: (0, 0)),
    ]

    mm_flops = 2 * N_pad * E_pad * H_pad + 2 * (2 * N_pad * H_pad * 2 * H_pad)

    if fuse_gather:
        grid_spec = pltpu.PrefetchScalarGridSpec(
            num_scalar_prefetch=1,                      # ids -> SMEM
            grid=grid,
            in_specs=[pl.BlockSpec((V, E_pad), lambda i, ids: (0, 0))] + wspecs_fused,
            out_specs=pl.BlockSpec((tile_n, H_pad), lambda i, ids: (i, 0)),
            scratch_shapes=[pltpu.VMEM((tile_n, E_pad), f32)],
        )
        inputs = (ids_flat, prepared["wv_f32"]) + weights
        bytes_accessed = (N_pad * 4 + V * E_pad * 4 + N_pad * H_pad * 4
                          + weight_bytes_resident // 2)
    else:
        # Fallback: gather in XLA directly from the pre-padded bf16 table,
        # stream (tile_n, E_pad) bf16 tiles through the kernel.
        emb = jnp.take(prepared["wv_bf16"], ids_flat, axis=0)     # (N_pad, E_pad) bf16
        grid_spec = pltpu.PrefetchScalarGridSpec(
            num_scalar_prefetch=0,
            grid=grid,
            in_specs=[pl.BlockSpec((tile_n, E_pad), lambda i: (i, 0))] + wspecs_plain,
            out_specs=pl.BlockSpec((tile_n, H_pad), lambda i: (i, 0)),
        )
        inputs = (emb,) + weights
        bytes_accessed = (N_pad * E_pad * 2 + N_pad * H_pad * 4
                          + weight_bytes_resident // 2)

    out_pad = pl.pallas_call(
        _make_kernel(fuse_gather, H_pad, tile_n),
        out_shape=jax.ShapeDtypeStruct((N_pad, H_pad), f32),
        grid_spec=grid_spec,
        compiler_params=pltpu.CompilerParams(
            dimension_semantics=("parallel",),          # independent token tiles
            vmem_limit_bytes=int(vmem_limit_bytes),
        ),
        cost_estimate=pl.CostEstimate(
            flops=int(mm_flops),
            transcendentals=int(2 * N_pad * H_pad),
            bytes_accessed=int(bytes_accessed),
        ),
    )(*inputs)

    return out_pad[:N, :H].reshape(B, S, H)


def init_params(key, embed_size, hidden_size):
    """Deterministic parameter init. Linear weights stored as (in, out)."""
    ks = jax.random.split(key, 9)
    scale = 0.05
    return {
        "w_proj": scale * jax.random.normal(ks[0], (embed_size, hidden_size), jnp.float32),
        "w_t0":   scale * jax.random.normal(ks[1], (hidden_size, hidden_size), jnp.float32),
        "b_t0":   scale * jax.random.normal(ks[2], (1, hidden_size), jnp.float32),
        "w_g0":   scale * jax.random.normal(ks[3], (hidden_size, hidden_size), jnp.float32),
        "b_g0":   scale * jax.random.normal(ks[4], (1, hidden_size), jnp.float32),
        "w_t1":   scale * jax.random.normal(ks[5], (hidden_size, hidden_size), jnp.float32),
        "b_t1":   scale * jax.random.normal(ks[6], (1, hidden_size), jnp.float32),
        "w_g1":   scale * jax.random.normal(ks[7], (hidden_size, hidden_size), jnp.float32),
        "b_g1":   scale * jax.random.normal(ks[8], (1, hidden_size), jnp.float32),
    }


def reference_forward(x_ids, word_vectors, params):
    """Pure-JAX f32 reference replicating the PyTorch forward (eval mode)."""
    emb = jnp.take(word_vectors, x_ids, axis=0)            # (B, S, E)
    x = emb @ params["w_proj"]                             # (B, S, H)
    for wt, bt, wg, bg in (
        (params["w_t0"], params["b_t0"], params["w_g0"], params["b_g0"]),
        (params["w_t1"], params["b_t1"], params["w_g1"], params["b_g1"]),
    ):
        g = jax.nn.sigmoid(x @ wg + bg)
        t = jax.nn.relu(x @ wt + bt)
        x = g * t + (1.0 - g) * x
    return x


if __name__ == "__main__":
    B, S = 2, 8           # batch, seq_len
    V, E = 50, 64         # vocab size, embed dim (word_vectors: (V, E))
    H = 32                # hidden_size

    key = jax.random.PRNGKey(0)
    k_wv, k_ids, k_params = jax.random.split(key, 3)

    word_vectors = jax.random.normal(k_wv, (V, E), jnp.float32)
    x_ids = jax.random.randint(k_ids, (B, S), 0, V, jnp.int32)
    params = init_params(k_params, E, H)

    ref = reference_forward(x_ids, word_vectors, params)

    # One-time packing/padding (hoisted out of the per-call forward).
    prepared = prepare_params(word_vectors, params)

    # Main path: fused in-kernel gather from the VMEM-resident table.
    out = jax.block_until_ready(custom_embedding_forward(x_ids, prepared))
    assert out.shape == (B, S, H)
    assert jnp.allclose(out, ref, atol=5e-2, rtol=5e-2), (
        f"fused path mismatch, max abs err {float(jnp.max(jnp.abs(out - ref)))}")

    # Exercise the multi-tile (grid > 1) parallel path.
    out_tiled = jax.block_until_ready(
        custom_embedding_forward(x_ids, prepared, max_tile_n=8))
    assert jnp.allclose(out_tiled, ref, atol=5e-2, rtol=5e-2), (
        f"tiled path mismatch, max abs err {float(jnp.max(jnp.abs(out_tiled - ref)))}")

    # Exercise the large-vocab fallback path (gather outside the kernel).
    out_fb = jax.block_until_ready(
        custom_embedding_forward(x_ids, prepared, vmem_table_budget_bytes=0))
    assert jnp.allclose(out_fb, ref, atol=5e-2, rtol=5e-2), (
        f"fallback path mismatch, max abs err {float(jnp.max(jnp.abs(out_fb - ref)))}")

    print("KERNEL_OK")
</pallas_src>

<mosaic_0001>
module attributes {stable_mosaic.version = 11 : i64} {
  func.func @kernel(%arg0: i32, %arg1: memref<16xi32, #tpu.memory_space<smem>>, %arg2: memref<50x128xf32, #tpu.memory_space<vmem>>, %arg3: memref<128x128xbf16, #tpu.memory_space<vmem>>, %arg4: memref<128x256xbf16, #tpu.memory_space<vmem>>, %arg5: memref<1x256xf32, #tpu.memory_space<vmem>>, %arg6: memref<128x256xbf16, #tpu.memory_space<vmem>>, %arg7: memref<1x256xf32, #tpu.memory_space<vmem>>, %arg8: memref<16x128xf32, #tpu.memory_space<vmem>>, %arg9: memref<16x128xf32, #tpu.memory_space<vmem>>) attributes {dimension_semantics = [#tpu.dimension_semantics<parallel>], iteration_bounds = array<i64: 1>, scalar_prefetch = 1 : i64, scratch_operands = 1 : i64, tpu.core_type = #tpu.core_type<tc>, window_params = [{pipeline_mode = #tpu.pipeline_mode<synchronous>, transform_indices = @transform_0, window_bounds = array<i64: 50, 128>}, {pipeline_mode = #tpu.pipeline_mode<synchronous>, transform_indices = @transform_1, window_bounds = array<i64: 128, 128>}, {pipeline_mode = #tpu.pipeline_mode<synchronous>, transform_indices = @transform_2, window_bounds = array<i64: 128, 256>}, {pipeline_mode = #tpu.pipeline_mode<synchronous>, transform_indices = @transform_3, window_bounds = array<i64: 1, 256>}, {pipeline_mode = #tpu.pipeline_mode<synchronous>, transform_indices = @transform_4, window_bounds = array<i64: 128, 256>}, {pipeline_mode = #tpu.pipeline_mode<synchronous>, transform_indices = @transform_5, window_bounds = array<i64: 1, 256>}, {transform_indices = @transform_6, window_bounds = array<i64: 16, 128>}]} {
    %c16_i32 = arith.constant 16 : i32
    %0 = arith.muli %arg0, %c16_i32 : i32
    %c0_i32 = arith.constant 0 : i32
    %c16_i32_0 = arith.constant 16 : i32
    %1 = arith.addi %c0_i32, %c16_i32_0 : i32
    %c1_i32 = arith.constant 1 : i32
    scf.for %arg10 = %c0_i32 to %1 step %c1_i32  : i32 {
      %43 = arith.addi %0, %arg10 : i32
      %44 = arith.index_cast %43 : i32 to index
      %45 = memref.load %arg1[%44] : memref<16xi32, #tpu.memory_space<smem>>
      %46 = arith.index_cast %45 : i32 to index
      %c0_21 = arith.constant 0 : index
      %47 = vector.load %arg2[%46, %c0_21] : memref<50x128xf32, #tpu.memory_space<vmem>>, vector<1x128xf32>
      %48 = arith.index_cast %arg10 : i32 to index
      %c0_22 = arith.constant 0 : index
      %49 = vector.load %arg9[%48, %c0_22] : memref<16x128xf32, #tpu.memory_space<vmem>>, vector<1x128xf32>
      tpu.vector_store %arg9[%48, %c0_22], %47 {strides = array<i32>} : memref<16x128xf32, #tpu.memory_space<vmem>>, vector<1x128xf32>,
    }
    %c16_i32_1 = arith.constant 16 : i32
    %c0 = arith.constant 0 : index
    %c0_2 = arith.constant 0 : index
    %2 = vector.load %arg9[%c0, %c0_2] : memref<16x128xf32, #tpu.memory_space<vmem>>, vector<16x128xf32>
    %3 = arith.truncf %2 : vector<16x128xf32> to vector<16x128xbf16>
    %c0_3 = arith.constant 0 : index
    %c0_4 = arith.constant 0 : index
    %4 = vector.load %arg3[%c0_3, %c0_4] : memref<128x128xbf16, #tpu.memory_space<vmem>>, vector<128x128xbf16>
    %cst = arith.constant dense<0.000000e+00> : vector<16x128xf32>
    %5 = tpu.matmul %3, %4, %cst {dimension_numbers = #tpu.dot_dimension_numbers<[1], [0], [0], [1], [0, 0, 1, 1], [], []>} : vector<16x128xbf16>, vector<128x128xbf16>, vector<16x128xf32> -> vector<16x128xf32>
    %6 = arith.truncf %5 : vector<16x128xf32> to vector<16x128xbf16>
    %c0_5 = arith.constant 0 : index
    %c0_6 = arith.constant 0 : index
    %7 = vector.load %arg4[%c0_5, %c0_6] : memref<128x256xbf16, #tpu.memory_space<vmem>>, vector<128x256xbf16>
    %cst_7 = arith.constant dense<0.000000e+00> : vector<16x256xf32>
    %8 = tpu.matmul %6, %7, %cst_7 {dimension_numbers = #tpu.dot_dimension_numbers<[1], [0], [0], [1], [0, 0, 1, 1], [], []>} : vector<16x128xbf16>, vector<128x256xbf16>, vector<16x256xf32> -> vector<16x256xf32>
    %c0_8 = arith.constant 0 : index
    %c0_9 = arith.constant 0 : index
    %9 = vector.load %arg5[%c0_8, %c0_9] : memref<1x256xf32, #tpu.memory_space<vmem>>, vector<1x256xf32>
    %10 = vector.broadcast %9 : vector<1x256xf32> to vector<16x256xf32>
    %11 = arith.addf %8, %10 : vector<16x256xf32>
    %12 = vector.extract_strided_slice %11 {offsets = [0, 0], sizes = [16, 128], strides = [1, 1]} : vector<16x256xf32> to vector<16x128xf32>
    %cst_10 = arith.constant 0.000000e+00 : f32
    %13 = vector.broadcast %cst_10 : f32 to vector<16x128xf32>
    %14 = arith.maximumf %12, %13 : vector<16x128xf32>
    %15 = vector.extract_strided_slice %11 {offsets = [0, 128], sizes = [16, 128], strides = [1, 1]} : vector<16x256xf32> to vector<16x128xf32>
    %16 = arith.negf %15 : vector<16x128xf32>
    %17 = math.exp %16 : vector<16x128xf32>
    %cst_11 = arith.constant 1.000000e+00 : f32
    %18 = vector.broadcast %cst_11 : f32 to vector<16x128xf32>
    %19 = arith.addf %18, %17 : vector<16x128xf32>
    %20 = arith.divf %18, %19 : vector<16x128xf32>
    %21 = arith.subf %14, %5 : vector<16x128xf32>
    %22 = arith.mulf %20, %21 : vector<16x128xf32>
    %23 = arith.addf %5, %22 : vector<16x128xf32>
    %24 = arith.truncf %23 : vector<16x128xf32> to vector<16x128xbf16>
    %c0_12 = arith.constant 0 : index
    %c0_13 = arith.constant 0 : index
    %25 = vector.load %arg6[%c0_12, %c0_13] : memref<128x256xbf16, #tpu.memory_space<vmem>>, vector<128x256xbf16>
    %cst_14 = arith.constant dense<0.000000e+00> : vector<16x256xf32>
    %26 = tpu.matmul %24, %25, %cst_14 {dimension_numbers = #tpu.dot_dimension_numbers<[1], [0], [0], [1], [0, 0, 1, 1], [], []>} : vector<16x128xbf16>, vector<128x256xbf16>, vector<16x256xf32> -> vector<16x256xf32>
    %c0_15 = arith.constant 0 : index
    %c0_16 = arith.constant 0 : index
    %27 = vector.load %arg7[%c0_15, %c0_16] : memref<1x256xf32, #tpu.memory_space<vmem>>, vector<1x256xf32>
    %28 = vector.broadcast %27 : vector<1x256xf32> to vector<16x256xf32>
    %29 = arith.addf %26, %28 : vector<16x256xf32>
    %30 = vector.extract_strided_slice %29 {offsets = [0, 0], sizes = [16, 128], strides = [1, 1]} : vector<16x256xf32> to vector<16x128xf32>
    %cst_17 = arith.constant 0.000000e+00 : f32
    %31 = vector.broadcast %cst_17 : f32 to vector<16x128xf32>
    %32 = arith.maximumf %30, %31 : vector<16x128xf32>
    %33 = vector.extract_strided_slice %29 {offsets = [0, 128], sizes = [16, 128], strides = [1, 1]} : vector<16x256xf32> to vector<16x128xf32>
    %34 = arith.negf %33 : vector<16x128xf32>
    %35 = math.exp %34 : vector<16x128xf32>
    %cst_18 = arith.constant 1.000000e+00 : f32
    %36 = vector.broadcast %cst_18 : f32 to vector<16x128xf32>
    %37 = arith.addf %36, %35 : vector<16x128xf32>
    %38 = arith.divf %36, %37 : vector<16x128xf32>
    %39 = arith.subf %32, %23 : vector<16x128xf32>
    %40 = arith.mulf %38, %39 : vector<16x128xf32>
    %41 = arith.addf %23, %40 : vector<16x128xf32>
    %c0_19 = arith.constant 0 : index
    %c0_20 = arith.constant 0 : index
    %42 = vector.load %arg8[%c0_19, %c0_20] : memref<16x128xf32, #tpu.memory_space<vmem>>, vector<16x128xf32>
    tpu.vector_store %arg8[%c0_19, %c0_20], %41 {strides = array<i32>} : memref<16x128xf32, #tpu.memory_space<vmem>>, vector<16x128xf32>,
    return
  }
  func.func @transform_0(%arg0: i32, %arg1: memref<16xi32, #tpu.memory_space<smem>>) -> (i32, i32) {
    %c0_i32 = arith.constant 0 : i32
    %c0_i32_0 = arith.constant 0 : i32
    %c0_i32_1 = arith.constant 0 : i32
    return %c0_i32, %c0_i32_0 : i32, i32
  }
  func.func @transform_1(%arg0: i32, %arg1: memref<16xi32, #tpu.memory_space<smem>>) -> (i32, i32) {
    %c0_i32 = arith.constant 0 : i32
    %c0_i32_0 = arith.constant 0 : i32
    %c0_i32_1 = arith.constant 0 : i32
    return %c0_i32, %c0_i32_0 : i32, i32
  }
  func.func @transform_2(%arg0: i32, %arg1: memref<16xi32, #tpu.memory_space<smem>>) -> (i32, i32) {
    %c0_i32 = arith.constant 0 : i32
    %c0_i32_0 = arith.constant 0 : i32
    %c0_i32_1 = arith.constant 0 : i32
    return %c0_i32, %c0_i32_0 : i32, i32
  }
  func.func @transform_3(%arg0: i32, %arg1: memref<16xi32, #tpu.memory_space<smem>>) -> (i32, i32) {
    %c0_i32 = arith.constant 0 : i32
    %c0_i32_0 = arith.constant 0 : i32
    %c0_i32_1 = arith.constant 0 : i32
    return %c0_i32, %c0_i32_0 : i32, i32
  }
  func.func @transform_4(%arg0: i32, %arg1: memref<16xi32, #tpu.memory_space<smem>>) -> (i32, i32) {
    %c0_i32 = arith.constant 0 : i32
    %c0_i32_0 = arith.constant 0 : i32
    %c0_i32_1 = arith.constant 0 : i32
    return %c0_i32, %c0_i32_0 : i32, i32
  }
  func.func @transform_5(%arg0: i32, %arg1: memref<16xi32, #tpu.memory_space<smem>>) -> (i32, i32) {
    %c0_i32 = arith.constant 0 : i32
    %c0_i32_0 = arith.constant 0 : i32
    %c0_i32_1 = arith.constant 0 : i32
    return %c0_i32, %c0_i32_0 : i32, i32
  }
  func.func @transform_6(%arg0: i32, %arg1: memref<16xi32, #tpu.memory_space<smem>>) -> (i32, i32) {
    %c0_i32 = arith.constant 0 : i32
    %c0_i32_0 = arith.constant 0 : i32
    return %arg0, %c0_i32 : i32, i32
  }
}

</mosaic_0001>

<bundles_post_ra>
// kernel: tpu_custom_call.1
= control target key start
LH: loop header
LB: loop body
LE: loop exit
PB: predicated region body
PF: predicated region fallthrough
CT: control target
= control target key end

     0   :  { %s962_s27 = smov [#allocation4]   ;;  %s1063_s0 = inlined_call_operand.hbm [shape: s32[16], index: 0, kind: input, shape index: {}]   ;;  %s1064_s1 = inlined_call_operand.hbm [shape: f32[50,128], index: 1, kind: input, shape index: {}]   ;;  %s1065_s2 = inlined_call_operand.hbm [shape: bf16[128,128], index: 2, kind: input, shape index: {}]   ;;  %s1066_s3 = inlined_call_operand.hbm [shape: bf16[128,256], index: 3, kind: input, shape index: {}]   ;;  %s1067_s4 = inlined_call_operand.vmem [shape: f32[1,256], index: 4, kind: input, shape index: {}]   ;;  %s1068_s5 = inlined_call_operand.hbm [shape: bf16[128,256], index: 5, kind: input, shape index: {}]   ;;  %s1069_s6 = inlined_call_operand.vmem [shape: f32[1,256], index: 6, kind: input, shape index: {}]   ;;  %s1070_s7 = inlined_call_operand.hbm [shape: f32[16,128], index: 7, kind: output, shape index: {}]  }
   0x1   :  { %s13_s26 = sshll.u32 %s1063_s0, 4  ;;  %s14_s26 = int_to_ptr.hbm [resolvable:$true] %s13_s26 }
   0x2   :  { %16 = dma.hbm_to_smem %s14_s26, 16, %s962_s27, [#allocation3] }
   0x3   :  { %948 = dma.done.wait [#allocation3], 16 }
   0x4   :  { %949 = vsyncadd [#allocation3], 4294967280 }
   0x5   :  { %19 = sfence }
   0x6   :  { %20 = vsyncpa [#allocation6], 0 }
   0x7   :  { %21 = vsyncpa [#allocation9], 0 }
   0x8   :  { %22 = vsyncpa [#allocation12], 0  ;;  %s41_s30 = sshll.u32 %s1065_s2, 4  ;;  %s42_s30 = int_to_ptr.hbm [resolvable:$true] %s41_s30 }
   0x9   :  { %23 = vsyncpa [#allocation7], 0  ;;  %s963_s8 = smov [#allocation8]   ;;  %s28_s11 = sshll.u32 %s1064_s1, 4  ;;  %s29_s11 = int_to_ptr.hbm [resolvable:$true] %s28_s11 }
   0xa   :  { %s43_s9 = sshll.u32 %s963_s8, 4  ;;  %s964_s12 = smov 64   ;;  %s44_s9 = int_to_ptr.vmem [resolvable:$true] %s43_s9 }
   0xb   :  { %s965_s13 = smov 4   ;;  %s966_s14 = smov [#allocation5]  }
   0xc   :  { %49 = dma.hbm_to_vmem [thread:$0]  %s42_s30, 1024, %s44_s9, [#allocation9], %s964_s12, %s964_s12, %s965_s13  }
   0xd   :  { %s30_s15 = sshll.u32 %s966_s14, 4  ;;  %s967_s16 = smov 128   ;;  %s31_s15 = int_to_ptr.vmem [resolvable:$true] %s30_s15 }
   0xe   :  { %s968_s17 = smov 8   ;;  %s54_s19 = sshll.u32 %s1066_s3, 4  ;;  %s55_s19 = int_to_ptr.hbm [resolvable:$true] %s54_s19 }
   0xf   :  { %36 = dma.hbm_to_vmem [thread:$0]  %s29_s11, 896, %s31_s15, [#allocation6], %s967_s16, %s967_s16, %s968_s17  }
  0x10   :  { %s969_s20 = smov [#allocation10]   ;;  %s69_s23 = sshll.u32 %s1068_s5, 4  ;;  %s70_s23 = int_to_ptr.hbm [resolvable:$true] %s69_s23 }
  0x11   :  { %s56_s1 = sshll.u32 %s969_s20, 4  ;;  %s970_s24 = smov [#allocation11]   ;;  %s57_s1 = int_to_ptr.vmem [resolvable:$true] %s56_s1 }
  0x12   :  { %62 = dma.hbm_to_vmem [thread:$0]  %s55_s19, 2048, %s57_s1, [#allocation9], %s967_s16, %s967_s16, %s968_s17  }
  0x13   :  { %s71_s25 = sshll.u32 %s970_s24, 4  ;;  %s72_s25 = int_to_ptr.vmem [resolvable:$true] %s71_s25 }
  0x14   :  { %77 = dma.hbm_to_vmem [thread:$0]  %s70_s23, 2048, %s72_s25, [#allocation12], %s967_s16, %s967_s16, %s968_s17  }
  0x15   :  { %950 = dma.done.wait [#allocation6], 896  }
  0x16   :  { %951 = vsyncadd [#allocation6], 4294966400 }
  0x17   :  { %952 = dma.done.wait [#allocation9], 3072  }
  0x18   :  { %953 = vsyncadd [#allocation9], 4294964224 }
  0x19   :  { %954 = dma.done.wait [#allocation12], 2048  }
  0x1a   :  { %955 = vsyncadd [#allocation12], 4294965248  ;;  %s958_s3 = smov 0  }
  0x1b LB: > { %s104_s5 = sld [smem:[#allocation4 + %s960_s3]]  ;;  %s107_s27 = scalar_lea.vmem [#allocation2], %s960_s3  ;;  %s960_s3 = sphi %s958_s3, %s102_s3  }
  0x1c   : > { %s102_s3 = sadd.s32 1, %s960_s3  }
  0x1d   : > { %p99_p0 = scmp.ge.s32.totalorder %s102_s3, 16  }
  0x1e   :  { %v745_v1 = vld [vmem:[#allocation8 + $0x38] sm:$0xff] (%p99_p0)  ;;  %v744_v2 = vld [vmem:[#allocation8 + $0x30] sm:$0xff] (%p99_p0)  ;;  %v656_v8 = vld [vmem:[#allocation10 + $0x60] sm:$0xf] (%p99_p0)  ;;  %s552_s0 = sshll.u32 (%p99_p0), %s1070_s7, 4  ;;  %s553_s0 = int_to_ptr.hbm [resolvable:$true] %s552_s0 }
  0x1f   :  { %101 = sbr.rel (!%p99_p0) target bundleno = 27 (0x1b), region = 69  ;;  %176 = vmatpush.bf16.msra.mxu0 (%p99_p0), %v745_v1  ;;  %v664_v3 = vld [vmem:[#allocation10 + $0x70] sm:$0xf] (%p99_p0)  ;;  %v761_v4 = vld [vmem:[#allocation10 + $0x74] sm:$0xf0] (%p99_p0)  ;;  %v743_v13 = vld [vmem:[#allocation8 + $0x28] sm:$0xff] (%p99_p0) }
  0x20   :  { %v665_v5 = vor.u32 (%p99_p0), %v761_v4, %v664_v3  ;;  %v760_v6 = vld [vmem:[#allocation10 + $0x74] sm:$0xf] (%p99_p0)  ;;  %v666_v7 = vld [vmem:[#allocation10 + $0x78] sm:$0xf0] (%p99_p0)  ;;  %v759_v10 = vld [vmem:[#allocation10 + $0x64] sm:$0xf0] (%p99_p0) }
  0x21   : > { %s105_s26 = scalar_lea.vmem [#allocation5], %s104_s5  ;;  %v669_v9 = vor.u32 (%p99_p0), %v760_v6, %v666_v7  ;;  %v758_v11 = vld [vmem:[#allocation10 + $0x64] sm:$0xf] (%p99_p0)  ;;  %v658_v12 = vld [vmem:[#allocation10 + $0x68] sm:$0xf0] (%p99_p0)  ;;  %v657_v14 = vor.u32 (%p99_p0), %v759_v10, %v656_v8  ;;  %v741_v27 = vld [vmem:[#allocation8 + $0x18] sm:$0xff] (%p99_p0) }
  0x22   : > { %v106_v0 = vld [vmem:[%s105_s26] sm:$0x1]  ;;  %293 = vmatpush.bf16.msra.mxu1 (%p99_p0), %v665_v5  ;;  %v661_v15 = vor.u32 (%p99_p0), %v758_v11, %v658_v12  ;;  %v648_v16 = vld [vmem:[#allocation10 + $0x50] sm:$0xf] (%p99_p0)  ;;  %v757_v17 = vld [vmem:[#allocation10 + $0x54] sm:$0xf0] (%p99_p0) }
  0x23   : > { %108 = vst [vmem:[%s107_s27] sm:$0x1] %v106_v0  ;;  %177 = vmatpush.bf16.msra.mxu0 (%p99_p0), %v744_v2  ;;  %307 = vmatpush.bf16.msra.mxu2 (%p99_p0), %v669_v9  ;;  %v756_v18 = vld [vmem:[#allocation10 + $0x54] sm:$0xf] (%p99_p0)  ;;  %v650_v19 = vld [vmem:[#allocation10 + $0x58] sm:$0xf0] (%p99_p0)  ;;  %v742_v20 = vld [vmem:[#allocation8 + $0x20] sm:$0xff] (%p99_p0)  ;;  %v649_v21 = vor.u32 (%p99_p0), %v757_v17, %v648_v16 }
  0x24   :  { %v653_v22 = vor.u32 %v756_v18, %v650_v19  ;;  %v640_v23 = vld [vmem:[#allocation10 + $0x40] sm:$0xf]  ;;  %v755_v24 = vld [vmem:[#allocation10 + $0x44] sm:$0xf0]  ;;  %v754_v25 = vld [vmem:[#allocation10 + $0x44] sm:$0xf] }
  0x25   :  { %v642_v26 = vld [vmem:[#allocation10 + $0x48] sm:$0xf0]  ;;  %v641_v28 = vor.u32 %v755_v24, %v640_v23  ;;  %v632_v30 = vld [vmem:[#allocation10 + $0x30] sm:$0xf]  ;;  %v753_v31 = vld [vmem:[#allocation10 + $0x34] sm:$0xf0] }
  0x26   :  { %294 = vmatpush.bf16.msra.mxu1 %v657_v14  ;;  %v645_v29 = vor.u32 %v754_v25, %v642_v26  ;;  %v752_v32 = vld [vmem:[#allocation10 + $0x34] sm:$0xf]  ;;  %v634_v33 = vld [vmem:[#allocation10 + $0x38] sm:$0xf0]  ;;  %v633_v35 = vor.u32 %v753_v31, %v632_v30  ;;  %v739_v37 = vld [vmem:[#allocation8 + $0x8] sm:$0xff] }
  0x27   :  { %178 = vmatpush.bf16.msra.mxu0 %v743_v13  ;;  %308 = vmatpush.bf16.msra.mxu2 %v661_v15  ;;  %v740_v34 = vld [vmem:[#allocation8 + $0x10] sm:$0xff]  ;;  %v637_v36 = vor.u32 %v752_v32, %v634_v33  ;;  %v738_v38 = vld [vmem:[#allocation8] sm:$0xff]  ;;  %v751_v43 = vld [vmem:[#allocation10 + $0x24] sm:$0xf0] }
  0x28   :  { %v624_v42 = vld [vmem:[#allocation10 + $0x20] sm:$0xf]  ;;  %v750_v44 = vld [vmem:[#allocation10 + $0x24] sm:$0xf]  ;;  %v626_v46 = vld [vmem:[#allocation10 + $0x28] sm:$0xf0] }
  0x29   :  { %v625_v45 = vor.u32 %v751_v43, %v624_v42  ;;  %v629_v47 = vor.u32 %v750_v44, %v626_v46  ;;  %v616_v48 = vld [vmem:[#allocation10 + $0x10] sm:$0xf]  ;;  %v749_v49 = vld [vmem:[#allocation10 + $0x14] sm:$0xf0]  ;;  %v748_v50 = vld [vmem:[#allocation10 + $0x14] sm:$0xf] }
  0x2a   :  { %295 = vmatpush.bf16.msra.mxu1 %v649_v21  ;;  %v109_v39 = vld [vmem:[#allocation2] sm:$0xff]  ;;  %v110_v40 = vld [vmem:[#allocation2 + $0x8] sm:$0xff]  ;;  %v617_v51 = vor.u32 %v749_v49, %v616_v48  ;;  %v747_v55 = vld [vmem:[#allocation10 + $0x4] sm:$0xf0] }
  0x2b   :  { %179 = vmatpush.bf16.msra.mxu0 %v742_v20  ;;  %309 = vmatpush.bf16.msra.mxu2 %v653_v22  ;;  %v111_v41 = vpack.c.bf16 %v110_v40, %v109_v39  ;;  %v618_v52 = vld [vmem:[#allocation10 + $0x18] sm:$0xf0]  ;;  %v608_v54 = vld [vmem:[#allocation10] sm:$0xf]  ;;  %v746_v56 = vld [vmem:[#allocation10 + $0x4] sm:$0xf] }
  0x2c   :  { %v621_v53 = vor.u32 %v748_v50, %v618_v52  ;;  %v609_v57 = vor.u32 %v747_v55, %v608_v54  ;;  %v610_v58 = vld [vmem:[#allocation10 + $0x8] sm:$0xf0]  ;;  %v730_v63 = vld [vmem:[#allocation11 + $0x70] sm:$0xf]  ;;  %v777_v0 = vld [vmem:[#allocation11 + $0x74] sm:$0xf0] }
  0x2d   :  { %v613_v59 = vor.u32 %v746_v56, %v610_v58  ;;  %v776_v1 = vld [vmem:[#allocation11 + $0x74] sm:$0xf]  ;;  %v731_v2 = vor.u32 %v777_v0, %v730_v63  ;;  %v732_v3 = vld [vmem:[#allocation11 + $0x78] sm:$0xf0]  ;;  %v722_v5 = vld [vmem:[#allocation11 + $0x60] sm:$0xf] }
  0x2e   :  { %296 = vmatpush.bf16.msra.mxu1 %v641_v28  ;;  %v735_v4 = vor.u32 %v776_v1, %v732_v3  ;;  %v775_v6 = vld [vmem:[#allocation11 + $0x64] sm:$0xf0]  ;;  %v774_v7 = vld [vmem:[#allocation11 + $0x64] sm:$0xf]  ;;  %v724_v9 = vld [vmem:[#allocation11 + $0x68] sm:$0xf0] }
  0x2f   :  { %180 = vmatpush.bf16.msra.mxu0 %v741_v27  ;;  %310 = vmatpush.bf16.msra.mxu2 %v645_v29  ;;  %v723_v8 = vor.u32 %v775_v6, %v722_v5  ;;  %v727_v10 = vor.u32 %v774_v7, %v724_v9  ;;  %v714_v11 = vld [vmem:[#allocation11 + $0x50] sm:$0xf]  ;;  %v773_v12 = vld [vmem:[#allocation11 + $0x54] sm:$0xf0]  ;;  %v772_v13 = vld [vmem:[#allocation11 + $0x54] sm:$0xf] }
  0x30   :  { %470 = vmatpush.bf16.msra.mxu3 %v731_v2  ;;  %v715_v14 = vor.u32 %v773_v12, %v714_v11  ;;  %v716_v15 = vld [vmem:[#allocation11 + $0x58] sm:$0xf0]  ;;  %v706_v17 = vld [vmem:[#allocation11 + $0x40] sm:$0xf]  ;;  %v771_v18 = vld [vmem:[#allocation11 + $0x44] sm:$0xf0] }
  0x31   :  { %v719_v16 = vor.u32 %v772_v13, %v716_v15  ;;  %v770_v19 = vld [vmem:[#allocation11 + $0x44] sm:$0xf]  ;;  %v707_v20 = vor.u32 %v771_v18, %v706_v17  ;;  %v708_v21 = vld [vmem:[#allocation11 + $0x48] sm:$0xf0]  ;;  %v698_v23 = vld [vmem:[#allocation11 + $0x30] sm:$0xf] }
  0x32   :  { %297 = vmatpush.bf16.msra.mxu1 %v633_v35  ;;  %v711_v22 = vor.u32 %v770_v19, %v708_v21  ;;  %v769_v24 = vld [vmem:[#allocation11 + $0x34] sm:$0xf0]  ;;  %v768_v25 = vld [vmem:[#allocation11 + $0x34] sm:$0xf]  ;;  %v207_v26 = vld [vmem:[%s1067_s4] sm:$0x3] }
  0x33   :  { %181 = vmatpush.bf16.msra.mxu0 %v740_v34  ;;  %311 = vmatpush.bf16.msra.mxu2 %v637_v36  ;;  %v699_v27 = vor.u32 %v769_v24, %v698_v23  ;;  %v700_v28 = vld [vmem:[#allocation11 + $0x38] sm:$0xf0]  ;;  %v210_v29 = vperm.slane %v207_v26, 1  ;;  %v690_v31 = vld [vmem:[#allocation11 + $0x20] sm:$0xf]  ;;  %v209_v0 = vperm.slane %v207_v26, 0 }
  0x34   :  { %471 = vmatpush.bf16.msra.mxu3 %v723_v8  ;;  %v703_v30 = vor.u32 %v768_v25, %v700_v28  ;;  %v767_v32 = vld [vmem:[#allocation11 + $0x24] sm:$0xf0]  ;;  %v766_v33 = vld [vmem:[#allocation11 + $0x24] sm:$0xf]  ;;  %v692_v36 = vld [vmem:[#allocation11 + $0x28] sm:$0xf0] }
  0x35   :  { %v691_v35 = vor.u32 %v767_v32, %v690_v31  ;;  %v695_v40 = vor.u32 %v766_v33, %v692_v36  ;;  %v684_v42 = vld [vmem:[#allocation11 + $0x18] sm:$0xf0]  ;;  %v674_v46 = vld [vmem:[#allocation11] sm:$0xf]  ;;  %v762_v48 = vld [vmem:[#allocation11 + $0x4] sm:$0xf] }
  0x36   :  { %298 = vmatpush.bf16.msra.mxu1 %v625_v45  ;;  %v676_v49 = vld [vmem:[#allocation11 + $0x8] sm:$0xf0]  ;;  %v384_v31 = vld [vmem:[%s1069_s6] sm:$0x3]  ;;  %s971_s6 = smov [#allocation13]  }
  0x37   :  { %182 = vmatpush.bf16.msra.mxu0 %v739_v37  ;;  %312 = vmatpush.bf16.msra.mxu2 %v629_v47  ;;  %v682_v37 = vld [vmem:[#allocation11 + $0x10] sm:$0xf]  ;;  %v763_v47 = vld [vmem:[#allocation11 + $0x4] sm:$0xf0]  ;;  %v387_v32 = vperm.slane %v384_v31, 1  ;;  %s550_s8 = sshll.u32 %s971_s6, 4  ;;  %s551_s8 = int_to_ptr.vmem [resolvable:$true] %s550_s8 }
  0x38   :  { %472 = vmatpush.bf16.msra.mxu3 %v715_v14  ;;  %v675_v50 = vor.u32 %v763_v47, %v674_v46 }
  0x3a   :  { %299 = vmatpush.bf16.msra.mxu1 %v617_v51  ;;  %v679_v51 = vor.u32 %v762_v48, %v676_v49 }
  0x3b   :  { %183 = vmatpush.bf16.msra.mxu0 %v738_v38  ;;  %313 = vmatpush.bf16.msra.mxu2 %v621_v53  ;;  %v765_v38 = vld [vmem:[#allocation11 + $0x14] sm:$0xf0] }
  0x3c   :  { %473 = vmatpush.bf16.msra.mxu3 %v707_v20  ;;  %v683_v43 = vor.u32 %v765_v38, %v682_v37 }
  0x3e   :  { %184 = vmatmul.bf16.vlgmr.msra.gmra.mxu0 %v111_v41  ;;  %300 = vmatpush.bf16.msra.mxu1 %v609_v57  ;;  %v764_v41 = vld [vmem:[#allocation11 + $0x14] sm:$0xf] }
  0x3f   :  { %314 = vmatpush.bf16.msra.mxu2 %v613_v59  ;;  %484 = vmatpush.bf16.msrb.mxu0 %v735_v4  ;;  %v687_v45 = vor.u32 %v764_v41, %v684_v42 }
  0x40   :  { %474 = vmatpush.bf16.msra.mxu3 %v699_v27 }
  0x43   :  { %485 = vmatpush.bf16.msrb.mxu0 %v727_v10 }
  0x44   :  { %475 = vmatpush.bf16.msra.mxu3 %v691_v35 }
  0x47   :  { %486 = vmatpush.bf16.msrb.mxu0 %v719_v16 }
  0x48   :  { %476 = vmatpush.bf16.msra.mxu3 %v683_v43 }
  0x4b   :  { %487 = vmatpush.bf16.msrb.mxu0 %v711_v22 }
  0x4c   :  { %477 = vmatpush.bf16.msra.mxu3 %v675_v50 }
  0x4f   :  { %488 = vmatpush.bf16.msrb.mxu0 %v703_v30 }
  0x53   :  { %489 = vmatpush.bf16.msrb.mxu0 %v695_v40  ;;  %v386_v40 = vperm.slane %v384_v31, 0 }
  0x57   :  { %490 = vmatpush.bf16.msrb.mxu0 %v687_v45 }
  0x5b   :  { %491 = vmatpush.bf16.msrb.mxu0 %v679_v51 }
  0xbb   :  { %v1036_v60 = vpop.f32.mrf.mxu0 }
  0xc3   :  { %v1038_v61 = vpop.f32.mrf.mxu0 }
  0xc4   :  { %v190_v62 = vpack.c.bf16 %v1038_v61, %v1036_v60 }
  0xc6   :  { %301 = vmatmul.bf16.vlgmr.msra.gmra.mxu1 %v190_v62  ;;  %315 = vmatmul.bf16.vlgmr.msra.gmra.mxu2 %v190_v62 }
 0x143   :  { %v302_v57 = vpop.f32.mrf.mxu1 }
 0x144   :  { %v303_v4 = vadd.f32 %v302_v57, %v209_v0 }
 0x146   :  { %v321_v11 = vmax.f32 %v303_v4, 0.0 }
 0x148   :  { %v361_v20 = vsub.f32 %v321_v11, %v1036_v60 }
 0x149   :  { %v316_v34 = vpop.f32.mrf.mxu2 }
 0x14a   :  { %v317_v39 = vadd.f32 %v316_v34, %v210_v29 }
 0x14b   :  { %v304_v2 = vpop.f32.mrf.mxu1 }
 0x14c   :  { %v670_v44 = vmul.f32 -1.442695, %v317_v39  ;;  %v305_v7 = vadd.f32 %v304_v2, %v209_v0 }
 0x14e   :  { %796 = vpow2.f32 %v670_v44  ;;  %v322_v14 = vmax.f32 %v305_v7, 0.0 }
 0x150   :  { %v362_v23 = vsub.f32 %v322_v14, %v1038_v61 }
 0x151   :  { %v318_v52 = vpop.f32.mrf.mxu2 }
 0x152   :  { %v319_v53 = vadd.f32 %v318_v52, %v210_v29 }
 0x154   :  { %v797_v54 = vpop.eup %796  ;;  %v671_v55 = vmul.f32 -1.442695, %v319_v53 }
 0x155   :  { %v329_v56 = vadd.f32 1.0, %v797_v54 }
 0x156   :  { %798 = vpow2.f32 %v671_v55 }
 0x157   :  { %800 = vrcp.f32 %v329_v56  ;;  %v342_v8 = vand.u32 2147483648, %v329_v56  ;;  %vm336_vm1 = vweird.f32 %v329_v56  ;;  %v340_v10 = vand.u32 2147483647, %v329_v56 }
 0x159   :  { %v343_v15 = vor.u32 1.1754944e-38, %v342_v8  ;;  %vm341_vm3 = vcmp.eq.f32.partialorder %v340_v10, 8.507059e+37 }
 0x15c   :  { %v799_v58 = vpop.eup %798 }
 0x15d   :  { %v801_v59 = vpop.eup %800  ;;  %v330_v62 = vadd.f32 1.0, %v799_v58 }
 0x15e   :  { %v332_v63 = vmul.f32 %v801_v59, %v329_v56  ;;  %vm337_vm0 = vweird.f32 %v801_v59 }
 0x15f   :  { %802 = vrcp.f32 %v330_v62  ;;  %vm338_vm2 = vmor %vm336_vm1, %vm337_vm0  ;;  %v357_v16 = vand.u32 2147483648, %v330_v62  ;;  %v355_v18 = vand.u32 2147483647, %v330_v62  ;;  %vm351_vm5 = vweird.f32 %v330_v62 }
 0x160   :  { %v333_v1 = vsub.f32 1.0, %v332_v63 }
 0x161   :  { %v358_v22 = vor.u32 1.1754944e-38, %v357_v16  ;;  %vm356_vm7 = vcmp.eq.f32.partialorder %v355_v18, 8.507059e+37 }
 0x162   :  { %v334_v3 = vmul.f32 %v801_v59, %v333_v1 }
 0x164   :  { %v335_v5 = vadd.f32 %v801_v59, %v334_v3 }
 0x165   :  { %v803_v6 = vpop.eup %802 }
 0x166   :  { %v347_v9 = vmul.f32 %v803_v6, %v330_v62  ;;  %v339_v13 = vsel %vm338_vm2, %v801_v59, %v335_v5  ;;  %vm352_vm4 = vweird.f32 %v803_v6 }
 0x167   :  { %v344_v19 = vsel %vm341_vm3, %v343_v15, %v339_v13  ;;  %vm353_vm6 = vmor %vm351_vm5, %vm352_vm4 }
 0x168   :  { %v348_v12 = vsub.f32 1.0, %v347_v9  ;;  %v363_v25 = vmul.f32 %v361_v20, %v344_v19 }
 0x16a   :  { %v349_v17 = vmul.f32 %v803_v6, %v348_v12  ;;  %v365_v28 = vadd.f32 %v363_v25, %v1036_v60 }
 0x16c   :  { %v350_v21 = vadd.f32 %v803_v6, %v349_v17 }
 0x16e   :  { %v354_v24 = vsel %vm353_vm6, %v803_v6, %v350_v21 }
 0x16f   :  { %v359_v26 = vsel %vm356_vm7, %v358_v22, %v354_v24 }
 0x170   :  { %v364_v27 = vmul.f32 %v362_v23, %v359_v26 }
 0x172   :  { %v1049_v29 = vadd.f32 %v364_v27, %v1038_v61 }
 0x174   :  { %v367_v30 = vpack.c.bf16 %v1049_v29, %v365_v28 }
 0x176   :  { %478 = vmatmul.bf16.vlgmr.msra.gmra.mxu3 %v367_v30  ;;  %492 = vmatmul.bf16.vlgmr.msrb.gmra.mxu0 %v367_v30 }
 0x1f3   :  { %v493_v33 = vpop.f32.mrf.mxu0 }
 0x1f4   :  { %v494_v34 = vadd.f32 %v493_v33, %v387_v32 }
 0x1f6   :  { %v736_v35 = vmul.f32 -1.442695, %v494_v34 }
 0x1f8   :  { %804 = vpow2.f32 %v736_v35 }
 0x1f9   :  { %v479_v61 = vpop.f32.mrf.mxu3 }
 0x1fa   :  { %v480_v45 = vadd.f32 %v479_v61, %v386_v40 }
 0x1fb   :  { %v495_v36 = vpop.f32.mrf.mxu0 }
 0x1fc   :  { %v496_v37 = vadd.f32 %v495_v36, %v387_v32  ;;  %v498_v48 = vmax.f32 %v480_v45, 0.0 }
 0x1fe   :  { %v805_v38 = vpop.eup %804  ;;  %v737_v60 = vmul.f32 -1.442695, %v496_v37  ;;  %v538_v57 = vsub.f32 %v498_v48, %v365_v28 }
 0x1ff   :  { %v506_v39 = vadd.f32 1.0, %v805_v38 }
 0x200   :  { %806 = vpow2.f32 %v737_v60 }
 0x201   :  { %808 = vrcp.f32 %v506_v39  ;;  %v519_v47 = vand.u32 2147483648, %v506_v39  ;;  %v517_v50 = vand.u32 2147483647, %v506_v39  ;;  %v481_v51 = vpop.f32.mrf.mxu3  ;;  %vm513_vm9 = vweird.f32 %v506_v39 }
 0x202   :  { %v482_v55 = vadd.f32 %v481_v51, %v386_v40 }
 0x203   :  { %v520_v54 = vor.u32 1.1754944e-38, %v519_v47  ;;  %vm518_vm11 = vcmp.eq.f32.partialorder %v517_v50, 8.507059e+37 }
 0x204   :  { %v499_v0 = vmax.f32 %v482_v55, 0.0 }
 0x206   :  { %v807_v41 = vpop.eup %806  ;;  %v539_v8 = vsub.f32 %v499_v0, %v1049_v29 }
 0x207   :  { %v809_v42 = vpop.eup %808  ;;  %v507_v43 = vadd.f32 1.0, %v807_v41 }
 0x208   :  { %v509_v44 = vmul.f32 %v809_v42, %v506_v39  ;;  %vm514_vm8 = vweird.f32 %v809_v42 }
 0x209   :  { %810 = vrcp.f32 %v507_v43  ;;  %vm515_vm10 = vmor %vm513_vm9, %vm514_vm8  ;;  %v534_v1 = vand.u32 2147483648, %v507_v43  ;;  %v532_v3 = vand.u32 2147483647, %v507_v43  ;;  %vm528_vm13 = vweird.f32 %v507_v43 }
 0x20a   :  { %v510_v46 = vsub.f32 1.0, %v509_v44 }
 0x20b   :  { %v535_v6 = vor.u32 1.1754944e-38, %v534_v1  ;;  %vm533_vm15 = vcmp.eq.f32.partialorder %v532_v3, 8.507059e+37 }
 0x20c   :  { %v511_v49 = vmul.f32 %v809_v42, %v510_v46 }
 0x20e   :  { %v512_v52 = vadd.f32 %v809_v42, %v511_v49 }
 0x20f   :  { %v811_v53 = vpop.eup %810 }
 0x210   :  { %v516_v56 = vsel %vm515_vm10, %v809_v42, %v512_v52  ;;  %v524_v58 = vmul.f32 %v811_v53, %v507_v43  ;;  %vm529_vm12 = vweird.f32 %v811_v53 }
 0x211   :  { %v521_v59 = vsel %vm518_vm11, %v520_v54, %v516_v56  ;;  %vm530_vm14 = vmor %vm528_vm13, %vm529_vm12 }
 0x212   :  { %v540_v62 = vmul.f32 %v538_v57, %v521_v59  ;;  %v525_v63 = vsub.f32 1.0, %v524_v58 }
 0x214   :  { %v526_v2 = vmul.f32 %v811_v53, %v525_v63  ;;  %v542_v4 = vadd.f32 %v540_v62, %v365_v28 }
 0x216   :  { %v527_v5 = vadd.f32 %v811_v53, %v526_v2  ;;  %544 = vst [vmem:[#allocation13] sm:$0xff] %v542_v4 }
 0x218   :  { %v531_v7 = vsel %vm530_vm14, %v811_v53, %v527_v5 }
 0x219   :  { %v536_v9 = vsel %vm533_vm15, %v535_v6, %v531_v7 }
 0x21a   :  { %v541_v10 = vmul.f32 %v539_v8, %v536_v9 }
 0x21c   :  { %v543_v11 = vadd.f32 %v541_v10, %v1049_v29 }
 0x21e   :  { %545 = vst [vmem:[#allocation13 + $0x8] sm:$0xff] %v543_v11 }
 0x21f   :  { %558 = dma.vmem_to_hbm [thread:$0]  %s551_s8, 256, %s553_s0, [#allocation7], %s967_s16, %s967_s16, %s968_s17  }
 0x220   :  { %956 = dma.done.wait [#allocation7], 256  }
 0x221   :  { %957 = vsyncadd [#allocation7], 4294967040 }
 0x222   :  { %563 = vsyncpa [#allocation6], 1 }
 0x223   :  { %564 = vsyncpa [#allocation9], 1 }
 0x224   :  { %565 = vsyncpa [#allocation12], 1 }
 0x225   :  { %566 = vsyncpa [#allocation7], 1 }

</bundles_post_ra>
